<compile_context>
chip_gen: v7x
topology: tpu7x:2x2x1
jax: 0.10.0
libtpu: 0.0.40
codegen_flags: <defaults>
</compile_context>

<pallas_src>
import functools

import jax
import jax.numpy as jnp
from jax import lax
from jax.experimental import pallas as pl
from jax.experimental.pallas import tpu as pltpu

EPS = 1e-5  # nn.InstanceNorm2d default


def _relu_ins_conv_kernel(x_ref, w_ref, b_ref, mask_ref, o_ref, *,
                          K, Wp, Ho, Wo, compute_dtype):
    """One batch sample per grid step.

    x_ref    : (1, C_in, F)        row-major flattened reflection-padded input,
                                   F = Hp*Wp + (K-1) trailing scratch elements
    w_ref    : (K*K, C_out, C_in)  tap-major weights, C_in on the lane axis
    b_ref    : (C_out, 1)          conv bias
    mask_ref : (1, L)              1.0 on valid output columns, 0.0 on row-seam junk
    o_ref    : (1, C_out, L)       L = Ho*Wp; junk columns are dropped in wrapper
    """
    L = Ho * Wp
    C_out = o_ref.shape[1]

    xflat = x_ref[0]                               # (C_in, F)

    # KxK conv as K*K MXU matmuls over contiguous lane slices (f32 accumulate).
    acc = jnp.zeros((C_out, L), jnp.float32)
    for kh in range(K):
        for kw in range(K):
            off = kh * Wp + kw
            patch = xflat[:, off:off + L].astype(compute_dtype)   # (C_in, L)
            wk = w_ref[kh * K + kw].astype(compute_dtype)          # (C_out, C_in)
            acc = acc + jnp.dot(wk, patch,
                                preferred_element_type=jnp.float32)

    y = acc + b_ref[...].astype(jnp.float32)       # broadcast (C_out, 1) over lanes

    # InstanceNorm2d(affine=False): per-channel stats over the Ho*Wo valid
    # positions only (biased variance, eps inside rsqrt).
    valid = mask_ref[...]                          # (1, L) f32
    n = float(Ho * Wo)
    mean = jnp.sum(y * valid, axis=1, keepdims=True) / n
    centered = (y - mean) * valid
    var = jnp.sum(centered * centered, axis=1, keepdims=True) / n
    y = (y - mean) * lax.rsqrt(var + EPS)

    # ReLU, lane-dense store.
    o_ref[...] = jnp.maximum(y, 0.0)[None].astype(o_ref.dtype)


def relu_ins_conv2d(x, w, b, *, stride=1, padding=0,
                    compute_dtype=jnp.float32):
    """x: (N, C_in, H, W); w: (C_out, C_in, K, K); b: (C_out,)."""
    N, C_in, H, W = x.shape
    C_out, C_in_w, K, K2 = w.shape
    assert C_in_w == C_in and K == K2
    # TODO(synk): stride > 1 (downsampling convs) not implemented in this kernel.
    assert stride == 1, "only stride=1 supported by this Pallas kernel"
    P = padding
    Hp, Wp = H + 2 * P, W + 2 * P
    Ho, Wo = Hp - K + 1, Wp - K + 1
    L = Ho * Wp                       # per-channel output slab length (lane axis)
    F = Hp * Wp + (K - 1)             # padded-input slab length (lane axis)

    # ReflectionPad2d(P) (pure data movement, done once in XLA), flatten rows,
    # append K-1 scratch elements so every tap reads a length-L contiguous slice.
    xpad = x if P == 0 else jnp.pad(
        x, ((0, 0), (0, 0), (P, P), (P, P)), mode="reflect")
    xflat = jnp.pad(xpad.reshape(N, C_in, Hp * Wp),
                    ((0, 0), (0, 0), (0, K - 1)))

    # Tap-major weights with C_in on the lane (last) axis: (K*K, C_out, C_in).
    wt = jnp.transpose(w, (2, 3, 0, 1)).reshape(K * K, C_out, C_in)
    bt = b.reshape(C_out, 1).astype(jnp.float32)

    # Valid-column mask (row-seam junk columns have (o % Wp) >= Wo).
    col = jnp.arange(L, dtype=jnp.int32) % Wp
    mask = (col < Wo).astype(jnp.float32).reshape(1, L)

    kernel = functools.partial(_relu_ins_conv_kernel, K=K, Wp=Wp, Ho=Ho, Wo=Wo,
                               compute_dtype=compute_dtype)

    out_flat = pl.pallas_call(
        kernel,
        out_shape=jax.ShapeDtypeStruct((N, C_out, L), x.dtype),
        grid_spec=pltpu.PrefetchScalarGridSpec(
            num_scalar_prefetch=0,
            grid=(N,),
            in_specs=[
                pl.BlockSpec((1, C_in, F), lambda n: (n, 0, 0)),
                pl.BlockSpec((K * K, C_out, C_in), lambda n: (0, 0, 0)),
                pl.BlockSpec((C_out, 1), lambda n: (0, 0)),
                pl.BlockSpec((1, L), lambda n: (0, 0)),
            ],
            out_specs=pl.BlockSpec((1, C_out, L), lambda n: (n, 0, 0)),
        ),
        compiler_params=pltpu.CompilerParams(
            dimension_semantics=("parallel",)),
    )(xflat, wt, bt, mask)

    # Drop the row-seam junk columns: (N, C_out, Ho*Wp) -> (N, C_out, Ho, Wo).
    return out_flat.reshape(N, C_out, Ho, Wp)[:, :, :, :Wo]


def _reference(x, w, b, padding):
    """Pure-JAX reference reproducing the PyTorch forward."""
    xp = x if padding == 0 else jnp.pad(
        x, ((0, 0), (0, 0), (padding, padding), (padding, padding)),
        mode="reflect")
    y = lax.conv_general_dilated(
        xp, w, window_strides=(1, 1), padding="VALID",
        dimension_numbers=("NCHW", "OIHW", "NCHW"))
    y = y + b[None, :, None, None]
    mu = jnp.mean(y, axis=(2, 3), keepdims=True)
    var = jnp.mean((y - mu) ** 2, axis=(2, 3), keepdims=True)
    y = (y - mu) * lax.rsqrt(var + EPS)
    return jnp.maximum(y, 0.0)


if __name__ == "__main__":
    # ReLUINSConv2d(n_in=4, n_out=4, kernel_size=3, stride=1, padding=1)
    N, C_in, C_out, H, W = 2, 4, 4, 16, 16
    K, stride, padding = 3, 1, 1

    key = jax.random.PRNGKey(0)
    kx, kw, kb = jax.random.split(key, 3)

    x = jax.random.normal(kx, (N, C_in, H, W), dtype=jnp.float32)

    # gaussian_weights_init: conv weight ~ N(0, 0.02); bias: PyTorch default uniform.
    w = 0.02 * jax.random.normal(kw, (C_out, C_in, K, K), dtype=jnp.float32)
    bound = 1.0 / float(jnp.sqrt(jnp.float32(C_in * K * K)))
    b = jax.random.uniform(kb, (C_out,), jnp.float32, -bound, bound)

    out = relu_ins_conv2d(x, w, b, stride=stride, padding=padding)
    out = jax.block_until_ready(out)

    ref = _reference(x, w, b, padding)
    assert out.shape == ref.shape == (N, C_out, H, W)
    assert jnp.allclose(out, ref, rtol=1e-4, atol=1e-4), "mismatch vs reference"

    print("KERNEL_OK")
</pallas_src>

<mosaic_0001>
module attributes {stable_mosaic.version = 11 : i64} {
  func.func @_relu_ins_conv_kernel(%arg0: i32, %arg1: memref<1x4x326xf32, #tpu.memory_space<vmem>>, %arg2: memref<9x4x4xf32, #tpu.memory_space<vmem>>, %arg3: memref<4x1xf32, #tpu.memory_space<vmem>>, %arg4: memref<1x288xf32, #tpu.memory_space<vmem>>, %arg5: memref<1x4x288xf32, #tpu.memory_space<vmem>>) attributes {dimension_semantics = [#tpu.dimension_semantics<parallel>], iteration_bounds = array<i64: 2>, scalar_prefetch = 0 : i64, scratch_operands = 0 : i64, tpu.core_type = #tpu.core_type<tc>, window_params = [{transform_indices = @transform_0, window_bounds = array<i64: 1, 4, 326>}, {pipeline_mode = #tpu.pipeline_mode<synchronous>, transform_indices = @transform_1, window_bounds = array<i64: 9, 4, 4>}, {pipeline_mode = #tpu.pipeline_mode<synchronous>, transform_indices = @transform_2, window_bounds = array<i64: 4, 1>}, {pipeline_mode = #tpu.pipeline_mode<synchronous>, transform_indices = @transform_3, window_bounds = array<i64: 1, 288>}, {transform_indices = @transform_4, window_bounds = array<i64: 1, 4, 288>}]} {
    %c0 = arith.constant 0 : index
    %c0_0 = arith.constant 0 : index
    %c0_1 = arith.constant 0 : index
    %0 = vector.load %arg1[%c0, %c0_0, %c0_1] : memref<1x4x326xf32, #tpu.memory_space<vmem>>, vector<1x4x326xf32>
    %1 = vector.shape_cast %0 : vector<1x4x326xf32> to vector<4x326xf32>
    %cst = arith.constant 0.000000e+00 : f32
    %2 = vector.broadcast %cst : f32 to vector<4x288xf32>
    %3 = vector.extract_strided_slice %1 {offsets = [0, 0], sizes = [4, 288], strides = [1, 1]} : vector<4x326xf32> to vector<4x288xf32>
    %c0_2 = arith.constant 0 : index
    %c0_3 = arith.constant 0 : index
    %c0_4 = arith.constant 0 : index
    %4 = vector.load %arg2[%c0_2, %c0_3, %c0_4] : memref<9x4x4xf32, #tpu.memory_space<vmem>>, vector<1x4x4xf32>
    %5 = vector.shape_cast %4 : vector<1x4x4xf32> to vector<4x4xf32>
    %cst_5 = arith.constant dense<0.000000e+00> : vector<4x288xf32>
    %6 = tpu.matmul %5, %3, %cst_5 {dimension_numbers = #tpu.dot_dimension_numbers<[1], [0], [0], [1], [0, 0, 1, 1], [], []>} : vector<4x4xf32>, vector<4x288xf32>, vector<4x288xf32> -> vector<4x288xf32>
    %7 = arith.addf %2, %6 : vector<4x288xf32>
    %8 = vector.extract_strided_slice %1 {offsets = [0, 1], sizes = [4, 288], strides = [1, 1]} : vector<4x326xf32> to vector<4x288xf32>
    %c1 = arith.constant 1 : index
    %c0_6 = arith.constant 0 : index
    %c0_7 = arith.constant 0 : index
    %9 = vector.load %arg2[%c1, %c0_6, %c0_7] : memref<9x4x4xf32, #tpu.memory_space<vmem>>, vector<1x4x4xf32>
    %10 = vector.shape_cast %9 : vector<1x4x4xf32> to vector<4x4xf32>
    %cst_8 = arith.constant dense<0.000000e+00> : vector<4x288xf32>
    %11 = tpu.matmul %10, %8, %cst_8 {dimension_numbers = #tpu.dot_dimension_numbers<[1], [0], [0], [1], [0, 0, 1, 1], [], []>} : vector<4x4xf32>, vector<4x288xf32>, vector<4x288xf32> -> vector<4x288xf32>
    %12 = arith.addf %7, %11 : vector<4x288xf32>
    %13 = vector.extract_strided_slice %1 {offsets = [0, 2], sizes = [4, 288], strides = [1, 1]} : vector<4x326xf32> to vector<4x288xf32>
    %c2 = arith.constant 2 : index
    %c0_9 = arith.constant 0 : index
    %c0_10 = arith.constant 0 : index
    %14 = vector.load %arg2[%c2, %c0_9, %c0_10] : memref<9x4x4xf32, #tpu.memory_space<vmem>>, vector<1x4x4xf32>
    %15 = vector.shape_cast %14 : vector<1x4x4xf32> to vector<4x4xf32>
    %cst_11 = arith.constant dense<0.000000e+00> : vector<4x288xf32>
    %16 = tpu.matmul %15, %13, %cst_11 {dimension_numbers = #tpu.dot_dimension_numbers<[1], [0], [0], [1], [0, 0, 1, 1], [], []>} : vector<4x4xf32>, vector<4x288xf32>, vector<4x288xf32> -> vector<4x288xf32>
    %17 = arith.addf %12, %16 : vector<4x288xf32>
    %18 = vector.extract_strided_slice %1 {offsets = [0, 18], sizes = [4, 288], strides = [1, 1]} : vector<4x326xf32> to vector<4x288xf32>
    %c3 = arith.constant 3 : index
    %c0_12 = arith.constant 0 : index
    %c0_13 = arith.constant 0 : index
    %19 = vector.load %arg2[%c3, %c0_12, %c0_13] : memref<9x4x4xf32, #tpu.memory_space<vmem>>, vector<1x4x4xf32>
    %20 = vector.shape_cast %19 : vector<1x4x4xf32> to vector<4x4xf32>
    %cst_14 = arith.constant dense<0.000000e+00> : vector<4x288xf32>
    %21 = tpu.matmul %20, %18, %cst_14 {dimension_numbers = #tpu.dot_dimension_numbers<[1], [0], [0], [1], [0, 0, 1, 1], [], []>} : vector<4x4xf32>, vector<4x288xf32>, vector<4x288xf32> -> vector<4x288xf32>
    %22 = arith.addf %17, %21 : vector<4x288xf32>
    %23 = vector.extract_strided_slice %1 {offsets = [0, 19], sizes = [4, 288], strides = [1, 1]} : vector<4x326xf32> to vector<4x288xf32>
    %c4 = arith.constant 4 : index
    %c0_15 = arith.constant 0 : index
    %c0_16 = arith.constant 0 : index
    %24 = vector.load %arg2[%c4, %c0_15, %c0_16] : memref<9x4x4xf32, #tpu.memory_space<vmem>>, vector<1x4x4xf32>
    %25 = vector.shape_cast %24 : vector<1x4x4xf32> to vector<4x4xf32>
    %cst_17 = arith.constant dense<0.000000e+00> : vector<4x288xf32>
    %26 = tpu.matmul %25, %23, %cst_17 {dimension_numbers = #tpu.dot_dimension_numbers<[1], [0], [0], [1], [0, 0, 1, 1], [], []>} : vector<4x4xf32>, vector<4x288xf32>, vector<4x288xf32> -> vector<4x288xf32>
    %27 = arith.addf %22, %26 : vector<4x288xf32>
    %28 = vector.extract_strided_slice %1 {offsets = [0, 20], sizes = [4, 288], strides = [1, 1]} : vector<4x326xf32> to vector<4x288xf32>
    %c5 = arith.constant 5 : index
    %c0_18 = arith.constant 0 : index
    %c0_19 = arith.constant 0 : index
    %29 = vector.load %arg2[%c5, %c0_18, %c0_19] : memref<9x4x4xf32, #tpu.memory_space<vmem>>, vector<1x4x4xf32>
    %30 = vector.shape_cast %29 : vector<1x4x4xf32> to vector<4x4xf32>
    %cst_20 = arith.constant dense<0.000000e+00> : vector<4x288xf32>
    %31 = tpu.matmul %30, %28, %cst_20 {dimension_numbers = #tpu.dot_dimension_numbers<[1], [0], [0], [1], [0, 0, 1, 1], [], []>} : vector<4x4xf32>, vector<4x288xf32>, vector<4x288xf32> -> vector<4x288xf32>
    %32 = arith.addf %27, %31 : vector<4x288xf32>
    %33 = vector.extract_strided_slice %1 {offsets = [0, 36], sizes = [4, 288], strides = [1, 1]} : vector<4x326xf32> to vector<4x288xf32>
    %c6 = arith.constant 6 : index
    %c0_21 = arith.constant 0 : index
    %c0_22 = arith.constant 0 : index
    %34 = vector.load %arg2[%c6, %c0_21, %c0_22] : memref<9x4x4xf32, #tpu.memory_space<vmem>>, vector<1x4x4xf32>
    %35 = vector.shape_cast %34 : vector<1x4x4xf32> to vector<4x4xf32>
    %cst_23 = arith.constant dense<0.000000e+00> : vector<4x288xf32>
    %36 = tpu.matmul %35, %33, %cst_23 {dimension_numbers = #tpu.dot_dimension_numbers<[1], [0], [0], [1], [0, 0, 1, 1], [], []>} : vector<4x4xf32>, vector<4x288xf32>, vector<4x288xf32> -> vector<4x288xf32>
    %37 = arith.addf %32, %36 : vector<4x288xf32>
    %38 = vector.extract_strided_slice %1 {offsets = [0, 37], sizes = [4, 288], strides = [1, 1]} : vector<4x326xf32> to vector<4x288xf32>
    %c7 = arith.constant 7 : index
    %c0_24 = arith.constant 0 : index
    %c0_25 = arith.constant 0 : index
    %39 = vector.load %arg2[%c7, %c0_24, %c0_25] : memref<9x4x4xf32, #tpu.memory_space<vmem>>, vector<1x4x4xf32>
    %40 = vector.shape_cast %39 : vector<1x4x4xf32> to vector<4x4xf32>
    %cst_26 = arith.constant dense<0.000000e+00> : vector<4x288xf32>
    %41 = tpu.matmul %40, %38, %cst_26 {dimension_numbers = #tpu.dot_dimension_numbers<[1], [0], [0], [1], [0, 0, 1, 1], [], []>} : vector<4x4xf32>, vector<4x288xf32>, vector<4x288xf32> -> vector<4x288xf32>
    %42 = arith.addf %37, %41 : vector<4x288xf32>
    %43 = vector.extract_strided_slice %1 {offsets = [0, 38], sizes = [4, 288], strides = [1, 1]} : vector<4x326xf32> to vector<4x288xf32>
    %c8 = arith.constant 8 : index
    %c0_27 = arith.constant 0 : index
    %c0_28 = arith.constant 0 : index
    %44 = vector.load %arg2[%c8, %c0_27, %c0_28] : memref<9x4x4xf32, #tpu.memory_space<vmem>>, vector<1x4x4xf32>
    %45 = vector.shape_cast %44 : vector<1x4x4xf32> to vector<4x4xf32>
    %cst_29 = arith.constant dense<0.000000e+00> : vector<4x288xf32>
    %46 = tpu.matmul %45, %43, %cst_29 {dimension_numbers = #tpu.dot_dimension_numbers<[1], [0], [0], [1], [0, 0, 1, 1], [], []>} : vector<4x4xf32>, vector<4x288xf32>, vector<4x288xf32> -> vector<4x288xf32>
    %47 = arith.addf %42, %46 : vector<4x288xf32>
    %c0_30 = arith.constant 0 : index
    %c0_31 = arith.constant 0 : index
    %48 = vector.load %arg3[%c0_30, %c0_31] : memref<4x1xf32, #tpu.memory_space<vmem>>, vector<4x1xf32>
    %49 = vector.broadcast %48 : vector<4x1xf32> to vector<4x288xf32>
    %50 = arith.addf %47, %49 : vector<4x288xf32>
    %c0_32 = arith.constant 0 : index
    %c0_33 = arith.constant 0 : index
    %51 = vector.load %arg4[%c0_32, %c0_33] : memref<1x288xf32, #tpu.memory_space<vmem>>, vector<1x288xf32>
    %52 = vector.broadcast %51 : vector<1x288xf32> to vector<4x288xf32>
    %53 = arith.mulf %50, %52 : vector<4x288xf32>
    %cst_34 = arith.constant dense<0.000000e+00> : vector<4xf32>
    %54 = vector.multi_reduction <add>, %53, %cst_34 [1] : vector<4x288xf32> to vector<4xf32>
    %55 = vector.shape_cast %54 : vector<4xf32> to vector<4x1xf32>
    %cst_35 = arith.constant 2.560000e+02 : f32
    %56 = vector.broadcast %cst_35 : f32 to vector<4x1xf32>
    %57 = arith.divf %55, %56 : vector<4x1xf32>
    %58 = vector.broadcast %57 : vector<4x1xf32> to vector<4x288xf32>
    %59 = arith.subf %50, %58 : vector<4x288xf32>
    %60 = vector.broadcast %51 : vector<1x288xf32> to vector<4x288xf32>
    %61 = arith.mulf %59, %60 : vector<4x288xf32>
    %62 = arith.mulf %61, %61 : vector<4x288xf32>
    %cst_36 = arith.constant dense<0.000000e+00> : vector<4xf32>
    %63 = vector.multi_reduction <add>, %62, %cst_36 [1] : vector<4x288xf32> to vector<4xf32>
    %64 = vector.shape_cast %63 : vector<4xf32> to vector<4x1xf32>
    %cst_37 = arith.constant 2.560000e+02 : f32
    %65 = vector.broadcast %cst_37 : f32 to vector<4x1xf32>
    %66 = arith.divf %64, %65 : vector<4x1xf32>
    %67 = vector.broadcast %57 : vector<4x1xf32> to vector<4x288xf32>
    %68 = arith.subf %50, %67 : vector<4x288xf32>
    %cst_38 = arith.constant 9.99999974E-6 : f32
    %69 = vector.broadcast %cst_38 : f32 to vector<4x1xf32>
    %70 = arith.addf %66, %69 : vector<4x1xf32>
    %71 = math.rsqrt %70 : vector<4x1xf32>
    %72 = vector.broadcast %71 : vector<4x1xf32> to vector<4x288xf32>
    %73 = arith.mulf %68, %72 : vector<4x288xf32>
    %cst_39 = arith.constant 0.000000e+00 : f32
    %74 = vector.broadcast %cst_39 : f32 to vector<4x288xf32>
    %75 = arith.maximumf %73, %74 : vector<4x288xf32>
    %76 = vector.shape_cast %75 : vector<4x288xf32> to vector<1x4x288xf32>
    %c0_40 = arith.constant 0 : index
    %c0_41 = arith.constant 0 : index
    %c0_42 = arith.constant 0 : index
    %77 = vector.load %arg5[%c0_40, %c0_41, %c0_42] : memref<1x4x288xf32, #tpu.memory_space<vmem>>, vector<1x4x288xf32>
    tpu.vector_store %arg5[%c0_40, %c0_41, %c0_42], %76 {strides = array<i32>} : memref<1x4x288xf32, #tpu.memory_space<vmem>>, vector<1x4x288xf32>,
    return
  }
  func.func @transform_0(%arg0: i32) -> (i32, i32, i32) {
    %c0_i32 = arith.constant 0 : i32
    %c0_i32_0 = arith.constant 0 : i32
    %c0_i32_1 = arith.constant 0 : i32
    return %arg0, %c0_i32, %c0_i32_0 : i32, i32, i32
  }
  func.func @transform_1(%arg0: i32) -> (i32, i32, i32) {
    %c0_i32 = arith.constant 0 : i32
    %c0_i32_0 = arith.constant 0 : i32
    %c0_i32_1 = arith.constant 0 : i32
    %c0_i32_2 = arith.constant 0 : i32
    return %c0_i32, %c0_i32_0, %c0_i32_1 : i32, i32, i32
  }
  func.func @transform_2(%arg0: i32) -> (i32, i32) {
    %c0_i32 = arith.constant 0 : i32
    %c0_i32_0 = arith.constant 0 : i32
    %c0_i32_1 = arith.constant 0 : i32
    return %c0_i32, %c0_i32_0 : i32, i32
  }
  func.func @transform_3(%arg0: i32) -> (i32, i32) {
    %c0_i32 = arith.constant 0 : i32
    %c0_i32_0 = arith.constant 0 : i32
    %c0_i32_1 = arith.constant 0 : i32
    return %c0_i32, %c0_i32_0 : i32, i32
  }
  func.func @transform_4(%arg0: i32) -> (i32, i32, i32) {
    %c0_i32 = arith.constant 0 : i32
    %c0_i32_0 = arith.constant 0 : i32
    %c0_i32_1 = arith.constant 0 : i32
    return %arg0, %c0_i32, %c0_i32_0 : i32, i32, i32
  }
}

</mosaic_0001>

<bundles_post_ra>
// kernel: tpu_custom_call.1
= control target key start
LH: loop header
LB: loop body
LE: loop exit
PB: predicated region body
PF: predicated region fallthrough
CT: control target
= control target key end

     0   :  { %9 = vsyncpa [#allocation3], 0  ;;  %s2336_s0 = inlined_call_operand.vmem [shape: f32[2,4,326], index: 0, kind: input, shape index: {}]   ;;  %s2337_s1 = inlined_call_operand.vmem [shape: f32[9,4,4], index: 1, kind: input, shape index: {}]   ;;  %s2338_s2 = inlined_call_operand.vmem [shape: f32[4,1], index: 2, kind: input, shape index: {}]   ;;  %s2339_s3 = inlined_call_operand.vmem [shape: f32[1,288], index: 3, kind: input, shape index: {}]   ;;  %s2340_s4 = inlined_call_operand.hbm [shape: f32[2,4,288], index: 4, kind: output, shape index: {}]  }
   0x1   :  { %11 = vsyncpa [#allocation3 + $0x1], 0  ;;  %s2105_s15 = smov 0   ;;  %s2107_s16 = smov 0  }
   0x2   :  { %s2109_s17 = smov 0   ;;  %s2111_s18 = smov 0  }
   0x3 LB: > { %s2126_s19 = sadd.s32 4294967295, %s2066_s18   ;;  %s1807_s20 = sadd.s32 4294967294, %s2066_s18   ;;  %s2066_s18 = sphi %s2111_s18, %s2346_s18   ;;  %s2062_s17 = sphi %s2109_s17, %s2345_s17   ;;  %s2058_s16 = sphi %s2107_s16, %s2344_s16   ;;  %s2054_s15 = sphi %s2105_s15, %s2343_s15  }
   0x4   : > { %s2130_s21 = sadd.s32 1, %s2066_s18   ;;  %s113_s22 = sadd.s32 1, %s2062_s17 }
   0x5   : > { %s110_s23 = ssub.s32 %s2066_s18, %s2130_s21  ;;  %p123_p0 = scmp.ne.s32.totalorder %s2062_s17, %s2058_s16 }
   0x6   : > { %p111_p1 = scmp.eq.s32.totalorder %s110_s23, 0  ;;  %p124_p2 = scmp.eq.s32.totalorder %s2126_s19, 1 }
   0x7   : > { %p129_p3 = scmp.ne.s32.totalorder %s2058_s16, %s2054_s15  ;;  %p130_p4 = scmp.eq.s32.totalorder %s1807_s20, 1 }
   0x8   : > { %s2141_s24 = scalar_select %p111_p1, %s2062_s17, %s113_s22  }
   0x9   : > { %p2143_p5 = por %p124_p2, %p123_p0  ;;  %p2147_p6 = por %p130_p4, %p129_p3 }
   0xa   : > { %p1810_p7 = scmp.ge.s32.totalorder %s2066_s18, 1  ;;  %p165_p8 = scmp.lt.s32.totalorder %s2066_s18, 3 }
   0xc   : > { %p166_p9 = pnand %p1810_p7, %p165_p8 }
   0xd   : > { %p191_p10 = scmp.lt.s32.totalorder (!%p166_p9), %s2126_s19, 1  ;;  %v2068_v0 = vmov (!%p166_p9), 0.0   ;;  %vm2069_vm0 = vmmov (!%p166_p9), 0   ;;  %s2070_s6 = smov (!%p166_p9), 127   ;;  %v1663_v4 = vld [vmem:[%s2338_s2] sm:$0xf] (!%p166_p9) }
   0xe   : > { %169 = sbr.rel (%p166_p9) target bundleno = 769 (0x301), region = 36  ;;  %1886 = vmatprep.subr.mxu1 (!%p166_p9), %v2068_v0  ;;  %288 = vmatprep.mubr.f32.mxu0 (!%p166_p9), %v2068_v0  ;;  %s2071_s7 = smov (!%p166_p9), 126   ;;  %v2078_v5 = vmov (!%p166_p9), 0   ;;  %vm217_vm1 = vcmask (!%p166_p9), 1043456   ;;  %vm210_vm2 = vcmask (!%p166_p9), 1039360   ;;  %vm213_vm3 = vcmask (!%p166_p9), 31744  }
   0xf   : > { %1888 = vmatprep.mubr.msk.f32.mxu1 (!%p166_p9), %vm2069_vm0, %v2068_v0  ;;  %s2072_s8 = smov (!%p166_p9), 110   ;;  %s2073_s9 = smov (!%p166_p9), 109   ;;  %2000 = vset.pattern.permute.xlu0 (!%p166_p9), %v2078_v5  ;;  %v1812_v11 = vld [vmem:[%s2337_s1 + $0x4] sm:$0xf] (!%p166_p9)  ;;  %vm523_vm4 = vcmask (!%p166_p9), 1031168   ;;  %vm687_vm5 = vcmask (!%p166_p9), 900096  }
  0x10   : > { %s2074_s10 = smov (!%p166_p9), 108   ;;  %s2075_s11 = smov (!%p166_p9), 92   ;;  %v198_v17 = vld [vmem:[%s2337_s1] sm:$0xf] (!%p166_p9)  ;;  %v1823_v22 = vld [vmem:[%s2337_s1 + $0x8] sm:$0xf] (!%p166_p9) }
  0x11   : > { %s2076_s12 = smov (!%p166_p9), 91   ;;  %s2077_s13 = smov (!%p166_p9), 90   ;;  %v1829_v25 = vld [vmem:[%s2337_s1 + $0xc] sm:$0xf] (!%p166_p9)  ;;  %vm851_vm6 = vcmask (!%p166_p9), 891904   ;;  %vm1015_vm7 = vcmask (!%p166_p9), 883712  }
  0x12   : > { %v1835_v27 = vld [vmem:[%s2337_s1 + $0x10] sm:$0xf] (!%p166_p9)  ;;  %v1841_v32 = vld [vmem:[%s2337_s1 + $0x14] sm:$0xf] (!%p166_p9)  ;;  %v1847_v39 = vld [vmem:[%s2337_s1 + $0x18] sm:$0xf] (!%p166_p9) }
  0x13   : > { %vm1179_vm8 = vcmask (!%p166_p9), 752640   ;;  %v1853_v42 = vld [vmem:[%s2337_s1 + $0x1c] sm:$0xf] (!%p166_p9)  ;;  %v1859_v46 = vld [vmem:[%s2337_s1 + $0x20] sm:$0xf] (!%p166_p9)  ;;  %vm1343_vm9 = vcmask (!%p166_p9), 744448  }
  0x14   : > { %vm1507_vm10 = vcmask (!%p166_p9), 736256   ;;  %vm1695_vm11 = vcmask (!%p166_p9), 257024   ;;  %s1949_s30 = smul.u32 (!%p166_p9), 192, %s2126_s19 }
  0x15   : > { %s192_s27 = scalar_select %p191_p10, %s2126_s19, 1 }
  0x17   : > { %s1948_s28 = smul.u32 12, %s192_s27 }
  0x19   : > { %s195_s5 = scalar_lea.vmem %s2336_s0, %s1948_s28  ;;  %s188_s28 = sand.u32 1, %s2058_s16  }
  0x1a   : > { %v196_v1 = vld [vmem:[%s195_s5] sm:$0xff]  ;;  %v197_v3 = vld [vmem:[%s195_s5 + $0x8] sm:$0xf]  ;;  %s1947_s29 = smul.u32 12, %s188_s28  ;;  %s1734_s19 = scalar_lea.sflag [#allocation3], %s188_s28 }
  0x1b   : > { %204 = vrot.lane.b32.xlu1 %v196_v1, %s2070_s6  ;;  %v203_v2 = vcombine.high %v196_v1, %v196_v1 }
  0x1c   : > { %s190_s5 = scalar_lea.vmem [#allocation2], %s1947_s29 }
  0x1d   : > { %206 = vrot.lane.b32.xlu0 %v203_v2, %s2070_s6 }
  0x1f   : > { %519 = vrot.lane.b32.xlu1 %v203_v2, %s2071_s7 }
  0x21   : > { %208 = vrot.lane.b32.xlu0 %v197_v3, %s2070_s6  ;;  %s1748_s6 = sshll.u32 %s190_s5, 4  ;;  %s2296_s6 = int_to_ptr.vmem [resolvable:$true] %s1748_s6 }
  0x23   : > { %517 = vrot.lane.b32.xlu1 %v196_v1, %s2071_s7 }
  0x25   : > { %521 = vrot.lane.b32.xlu0 %v197_v3, %s2071_s7 }
  0x27   : > { %685 = vrot.lane.b32.xlu1 %v197_v3, %s2072_s8 }
  0x29   : > { %683 = vrot.lane.b32.xlu0 %v203_v2, %s2072_s8 }
  0x2b   : > { %847 = vrot.lane.b32.xlu1 %v203_v2, %s2073_s9 }
  0x2d   : > { %681 = vrot.lane.b32.xlu0 %v196_v1, %s2072_s8 }
  0x2f   : > { %845 = vrot.lane.b32.xlu1 %v196_v1, %s2073_s9 }
  0x31   : > { %849 = vrot.lane.b32.xlu0 %v197_v3, %s2073_s9  ;;  %s2294_s9 = scalar_lea.hbm %s2340_s4, %s1949_s30 }
  0x33   : > { %1013 = vrot.lane.b32.xlu1 %v197_v3, %s2074_s10 }
  0x35   : > { %1011 = vrot.lane.b32.xlu0 %v203_v2, %s2074_s10 }
  0x37   : > { %1175 = vrot.lane.b32.xlu1 %v203_v2, %s2075_s11 }
  0x39   : > { %1009 = vrot.lane.b32.xlu0 %v196_v1, %s2074_s10  ;;  %s2004_s10 = scalar_lea.vmem %s2296_s6, 192 }
  0x3a   : > { %p2005_p11 = scmp.ne.s32.totalorder %s2296_s6, %s2004_s10 }
  0x3b   : > { %1173 = vrot.lane.b32.xlu1 %v196_v1, %s2075_s11 }
  0x3c   : > { %p2006_p12 = pnand %p2005_p11, %p2143_p5 }
  0x3d   : > { %1177 = vrot.lane.b32.xlu0 %v197_v3, %s2075_s11  ;;  %s2079_s11 = smov [#allocation2]  }
  0x3e   : > { %p2007_p13 = pneg %p2006_p12 }
  0x3f   : > { %1341 = vrot.lane.b32.xlu1 %v197_v3, %s2076_s12 }
  0x41   : > { %1339 = vrot.lane.b32.xlu0 %v203_v2, %s2076_s12 }
  0x43   : > { %1503 = vrot.lane.b32.xlu1 %v203_v2, %s2077_s13 }
  0x45   : > { %1337 = vrot.lane.b32.xlu0 %v196_v1, %s2076_s12  ;;  %s2008_s12 = sshll.u32 %s2079_s11, 4  ;;  %s2009_s12 = int_to_ptr.vmem [resolvable:$false] %s2008_s12 }
  0x46   : > { %p2011_p0 = scmp.lt.s32.totalorder %s2296_s6, %s2009_s12 }
  0x47   : > { %1501 = vrot.lane.b32.xlu1 %v196_v1, %s2077_s13 }
  0x49   : > { %1505 = vrot.lane.b32.xlu0 %v197_v3, %s2077_s13  ;;  %s2010_s13 = scalar_lea.vmem %s2009_s12, 384 }
  0x4a   : > { %p2012_p1 = scmp.lt.s32.totalorder %s2010_s13, %s2004_s10 }
  0x4c   : > { %p2013_p2 = por %p2012_p1, %p2011_p0 }
  0x4d   : > { %1666 = vperm.xlu0 %2000, %v1663_v4  }
  0x4e   : > { %p2014_p3 = pnand %p2013_p2, %p2007_p13 }
  0x8d   : > { %v205_v6 = vpop.permute.xlu1 %204 }
  0x8f   : > { %v207_v7 = vpop.permute.xlu0 %206 }
  0x90   : > { %v211_v12 = vsel %vm210_vm2, %v205_v6, %v207_v7 }
  0x91   : > { %v520_v8 = vpop.permute.xlu1 %519 }
  0x93   : > { %v209_v9 = vpop.permute.xlu0 %208 }
  0x94   : > { %1887 = vmatpush3.msk.msra.mxu1 %vm217_vm1, %v209_v9  ;;  %v212_v10 = vsel %vm210_vm2, %v207_v7, %v209_v9 }
  0x95   : > { %1813 = vmatprep.subr.msk.mxu0 %vm217_vm1, %v212_v10  ;;  %v518_v13 = vpop.permute.xlu1 %517  ;;  %1889 = vmatmul.mubr.msk.f32.vlgmr.msra.gmra.mrb[0].mxu1 %vm213_vm3, %v1812_v11 }
  0x96   : > { %1814 = vmatpush1.msk.msra.mxu0 %vm217_vm1, %v211_v12  ;;  %1891 = vmatprep.subr.mxu1 %v2068_v0  ;;  %v524_v19 = vsel %vm523_vm4, %v518_v13, %v520_v8 }
  0x97   : > { %1815 = vmatmul.mubr.msk.f32.vlgmr.msra.gmra.mrb[0].mxu0 %vm213_vm3, %v1812_v11  ;;  %1818 = vmatprep.subr.msk.mxu0 %vm217_vm1, %v203_v2  ;;  %v522_v14 = vpop.permute.xlu0 %521 }
  0x98   : > { %1819 = vmatpush1.msk.msra.mxu0 %vm217_vm1, %v196_v1  ;;  %v525_v15 = vsel %vm523_vm4, %v520_v8, %v522_v14  ;;  %1892 = vmatpush3.msk.msra.mxu1 %vm217_vm1, %v197_v3 }
  0x99   : > { %1824 = vmatprep.subr.msk.mxu0 %vm217_vm1, %v525_v15  ;;  %1893 = vmatprep.mubr.msk.f32.mxu1 %vm2069_vm0, %v2068_v0  ;;  %v686_v16 = vpop.permute.xlu1 %685 }
  0x9a   : > { %1896 = vmatprep.subr.mxu1 %v2068_v0  ;;  %438 = vmatprep.mubr.f32.mxu0 %v2068_v0 }
  0x9b   : > { %1894 = vmatmul.mubr.msk.f32.vlgmr.msra.gmra.mrb[2].mxu1 %vm213_vm3, %v198_v17  ;;  %v684_v18 = vpop.permute.xlu0 %683 }
  0x9c   : > { %1897 = vmatpush3.msk.msra.mxu1 %vm217_vm1, %v522_v14  ;;  %1898 = vmatprep.mubr.msk.f32.mxu1 %vm2069_vm0, %v2068_v0  ;;  %v689_v21 = vsel %vm687_vm5, %v684_v18, %v686_v16 }
  0x9d   : > { %1901 = vmatprep.subr.mxu1 %v2068_v0  ;;  %v848_v20 = vpop.permute.xlu1 %847 }
  0x9f   : > { %1820 = vmatmul.mubr.msk.f32.vlgmr.msra.gmra.mrb[0].mxu0 %vm213_vm3, %v198_v17  ;;  %v682_v23 = vpop.permute.xlu0 %681  ;;  %1899 = vmatmul.mubr.msk.f32.vlgmr.msra.gmra.mrb[4].mxu1 %vm213_vm3, %v1823_v22  ;;  %v1674_v17 = vlaneseq }
  0xa0   : > { %1825 = vmatpush1.msk.msra.mxu0 %vm217_vm1, %v524_v19  ;;  %599 = vmatprep.mubr.f32.mxu0 %v2068_v0  ;;  %v688_v28 = vsel %vm687_vm5, %v682_v23, %v684_v18  ;;  %v1672_v23 = vld [vmem:[%s2339_s3] sm:$0x7] }
  0xa1   : > { %1830 = vmatprep.subr.msk.mxu0 %vm217_vm1, %v689_v21  ;;  %1902 = vmatpush3.msk.msra.mxu1 %vm217_vm1, %v686_v16  ;;  %v846_v24 = vpop.permute.xlu1 %845  ;;  %v1675_v18 = vshrl.u32 %v1674_v17, 7 }
  0xa2   : > { %1903 = vmatprep.mubr.msk.f32.mxu1 %vm2069_vm0, %v2068_v0  ;;  %1906 = vmatprep.subr.mxu1 %v2068_v0  ;;  %v852_v35 = vsel %vm851_vm6, %v846_v24, %v848_v20 }
  0xa3   : > { %v850_v26 = vpop.permute.xlu0 %849  ;;  %1904 = vmatmul.mubr.msk.f32.vlgmr.msra.gmra.mrb[6].mxu1 %vm213_vm3, %v1829_v25  ;;  %v1676_v19 = vsub.s32 0, %v1675_v18  ;;  %v1684_v21 = vsub.s32 2, %v1675_v18 }
  0xa4   : > { %1907 = vmatpush3.msk.msra.mxu1 %vm217_vm1, %v850_v26  ;;  %1908 = vmatprep.mubr.msk.f32.mxu1 %vm2069_vm0, %v2068_v0  ;;  %v853_v30 = vsel %vm851_vm6, %v848_v20, %v850_v26  ;;  %v1680_v20 = vsub.s32 1, %v1675_v18 }
  0xa5   : > { %v1014_v29 = vpop.permute.xlu1 %1013  ;;  %1911 = vmatprep.subr.mxu1 %v2068_v0  ;;  %v1677_v24 = vrot.slane %v1672_v23, %v1676_v19 }
  0xa7   : > { %1826 = vmatmul.mubr.msk.f32.vlgmr.msra.gmra.mrb[0].mxu0 %vm213_vm3, %v1823_v22  ;;  %v1012_v31 = vpop.permute.xlu0 %1011  ;;  %1909 = vmatmul.mubr.msk.f32.vlgmr.msra.gmra.mrb[8].mxu1 %vm213_vm3, %v1835_v27 }
  0xa8   : > { %1831 = vmatpush1.msk.msra.mxu0 %vm217_vm1, %v688_v28  ;;  %763 = vmatprep.mubr.f32.mxu0 %v2068_v0  ;;  %v1017_v37 = vsel %vm1015_vm7, %v1012_v31, %v1014_v29  ;;  %v1685_v28 = vrot.slane %v1672_v23, %v1684_v21 }
  0xa9   : > { %1836 = vmatprep.subr.msk.mxu0 %vm217_vm1, %v853_v30  ;;  %v1176_v33 = vpop.permute.xlu1 %1175  ;;  %1912 = vmatpush3.msk.msra.mxu1 %vm217_vm1, %v1014_v29 }
  0xaa   : > { %1913 = vmatprep.mubr.msk.f32.mxu1 %vm2069_vm0, %v2068_v0  ;;  %1916 = vmatprep.subr.mxu1 %v2068_v0 }
  0xab   : > { %v1010_v34 = vpop.permute.xlu0 %1009  ;;  %1914 = vmatmul.mubr.msk.f32.vlgmr.msra.gmra.mrb[10].mxu1 %vm213_vm3, %v1841_v32 }
  0xac   : > { %1918 = vmatprep.mubr.msk.f32.mxu1 %vm2069_vm0, %v2068_v0  ;;  %v1016_v43 = vsel %vm1015_vm7, %v1010_v34, %v1012_v31 }
  0xad   : > { %v1174_v36 = vpop.permute.xlu1 %1173 }
  0xae   : > { %v1180_v48 = vsel %vm1179_vm8, %v1174_v36, %v1176_v33 }
  0xaf   : > { %1832 = vmatmul.mubr.msk.f32.vlgmr.msra.gmra.mrb[0].mxu0 %vm213_vm3, %v1829_v25  ;;  %v1178_v38 = vpop.permute.xlu0 %1177 }
  0xb0   : > { %1837 = vmatpush1.msk.msra.mxu0 %vm217_vm1, %v852_v35  ;;  %927 = vmatprep.mubr.f32.mxu0 %v2068_v0  ;;  %v1181_v44 = vsel %vm1179_vm8, %v1176_v33, %v1178_v38 }
  0xb1   : > { %1842 = vmatprep.subr.msk.mxu0 %vm217_vm1, %v1017_v37  ;;  %1917 = vmatpush3.msk.msra.mxu1 %vm217_vm1, %v1178_v38  ;;  %v1342_v40 = vpop.permute.xlu1 %1341 }
  0xb2   : > { %1919 = vmatmul.mubr.msk.f32.vlgmr.msra.gmra.mrb[12].mxu1 %vm213_vm3, %v1847_v39  ;;  %1921 = vmatprep.subr.mxu1 %v2068_v0 }
  0xb3   : > { %v1340_v41 = vpop.permute.xlu0 %1339  ;;  %1922 = vmatpush3.msk.msra.mxu1 %vm217_vm1, %v1342_v40  ;;  %1923 = vmatprep.mubr.msk.f32.mxu1 %vm2069_vm0, %v2068_v0 }
  0xb4   : > { %1926 = vmatprep.subr.mxu1 %v2068_v0  ;;  %v1345_v49 = vsel %vm1343_vm9, %v1340_v41, %v1342_v40 }
  0xb5   : > { %v1504_v50 = vpop.permute.xlu1 %1503 }
  0xb6   : > { %1924 = vmatmul.mubr.msk.f32.vlgmr.msra.gmra.mrb[14].mxu1 %vm213_vm3, %v1853_v42 }
  0xb7   : > { %1838 = vmatmul.mubr.msk.f32.vlgmr.msra.gmra.mrb[0].mxu0 %vm213_vm3, %v1835_v27  ;;  %v1338_v45 = vpop.permute.xlu0 %1337  ;;  %1928 = vmatprep.mubr.msk.f32.mxu1 %vm2069_vm0, %v2068_v0  ;;  %v1681_v27 = vrot.slane %v1672_v23, %v1680_v20 }
  0xb8   : > { %1843 = vmatpush1.msk.msra.mxu0 %vm217_vm1, %v1016_v43  ;;  %1091 = vmatprep.mubr.f32.mxu0 %v2068_v0  ;;  %v1344_v51 = vsel %vm1343_vm9, %v1338_v45, %v1340_v41 }
  0xb9   : > { %1848 = vmatprep.subr.msk.mxu0 %vm217_vm1, %v1181_v44  ;;  %v1502_v53 = vpop.permute.xlu1 %1501 }
  0xba   : > { %v1508_v54 = vsel %vm1507_vm10, %v1502_v53, %v1504_v50 }
  0xbb   : > { %v1506_v47 = vpop.permute.xlu0 %1505 }
  0xbc   : > { %1927 = vmatpush3.msk.msra.mxu1 %vm217_vm1, %v1506_v47  ;;  %v1509_v52 = vsel %vm1507_vm10, %v1504_v50, %v1506_v47 }
  0xbd   : > { %1929 = vmatmul.mubr.msk.f32.vlgmr.msra.gmra.mrb[16].mxu1 %vm213_vm3, %v1859_v46 }
  0xbf   : > { %1844 = vmatmul.mubr.msk.f32.vlgmr.msra.gmra.mrb[0].mxu0 %vm213_vm3, %v1841_v32 }
  0xc0   : > { %1849 = vmatpush1.msk.msra.mxu0 %vm217_vm1, %v1180_v48  ;;  %1255 = vmatprep.mubr.f32.mxu0 %v2068_v0 }
  0xc1   : > { %1854 = vmatprep.subr.msk.mxu0 %vm217_vm1, %v1345_v49 }
  0xc7   : > { %1850 = vmatmul.mubr.msk.f32.vlgmr.msra.gmra.mrb[0].mxu0 %vm213_vm3, %v1847_v39 }
  0xc8   : > { %1855 = vmatpush1.msk.msra.mxu0 %vm217_vm1, %v1344_v51  ;;  %1419 = vmatprep.mubr.f32.mxu0 %v2068_v0 }
  0xc9   : > { %1860 = vmatprep.subr.msk.mxu0 %vm217_vm1, %v1509_v52 }
  0xcc   : > { %v1667_v22 = vpop.permute.xlu0 %1666 }
  0xcf   : > { %1856 = vmatmul.mubr.msk.f32.vlgmr.msra.gmra.mrb[0].mxu0 %vm213_vm3, %v1853_v42 }
  0xd0   : > { %1861 = vmatpush1.msk.msra.mxu0 %vm217_vm1, %v1508_v54  ;;  %1583 = vmatprep.mubr.f32.mxu0 %v2068_v0 }
  0xd7   : > { %1862 = vmatmul.mubr.msk.f32.vlgmr.msra.gmra.mrb[0].mxu0 %vm213_vm3, %v1859_v46 }
 0x168   : > { %v361_v55 = vpop.f32.mrb[0].mxu1 }
 0x169   : > { %v1890_v56 = vpop.f32.mrb[1].mxu1 }
 0x16e   : > { %v511_v57 = vpop.f32.mrb[2].mxu1 }
 0x16f   : > { %v512_v58 = vadd.f32 %v511_v57, %v361_v55  ;;  %v1895_v59 = vpop.f32.mrb[3].mxu1 }
 0x172   : > { %v672_v60 = vpop.f32.mrb[4].mxu1 }
 0x173   : > { %v678_v61 = vadd.f32 %v672_v60, %v512_v58  ;;  %v1900_v62 = vpop.f32.mrb[5].mxu1 }
 0x176   : > { %v836_v63 = vpop.f32.mrb[6].mxu1 }
 0x177   : > { %v842_v1 = vadd.f32 %v836_v63, %v678_v61  ;;  %v1905_v2 = vpop.f32.mrb[7].mxu1 }
 0x17a   : > { %v1000_v3 = vpop.f32.mrb[8].mxu1 }
 0x17b   : > { %v1006_v4 = vadd.f32 %v1000_v3, %v842_v1  ;;  %v1910_v5 = vpop.f32.mrb[9].mxu1 }
 0x17e   : > { %v1164_v6 = vpop.f32.mrb[10].mxu1 }
 0x17f   : > { %v1170_v7 = vadd.f32 %v1164_v6, %v1006_v4  ;;  %v1915_v8 = vpop.f32.mrb[11].mxu1 }
 0x185   : > { %v1328_v0 = vpop.f32.mrb[12].mxu1 }
 0x186   : > { %v1334_v9 = vadd.f32 %v1328_v0, %v1170_v7  ;;  %v1920_v10 = vpop.f32.mrb[13].mxu1 }
 0x189   : > { %v1492_v11 = vpop.f32.mrb[14].mxu1 }
 0x18a   : > { %v1498_v12 = vadd.f32 %v1492_v11, %v1334_v9  ;;  %v1925_v13 = vpop.f32.mrb[15].mxu1 }
 0x190   : > { %v1656_v14 = vpop.f32.mrb[16].mxu1 }
 0x191   : > { %v1662_v15 = vadd.f32 %v1656_v14, %v1498_v12  ;;  %v1930_v16 = vpop.f32.mrb[17].mxu1 }
 0x193   : > { %v1671_v25 = vadd.f32 %v1667_v22, %v1662_v15 }
 0x195   : > { %v1691_v34 = vmul.f32 %v1685_v28, %v1671_v25 }
 0x197   : > { %v1696_v38 = vsel %vm1695_vm11, %v1691_v34, 0.0 }
 0x1aa   : > { %v1585_v26 = vpop.f32.mrb[0].mxu0 }
 0x1ab   : > { %v1669_v29 = vadd.f32 %v1667_v22, %v1585_v26  ;;  %v1587_v30 = vpop.f32.mrb[1].mxu0 }
 0x1ac   : > { %v1670_v31 = vadd.f32 %v1667_v22, %v1587_v30 }
 0x1ad   : > { %v1689_v32 = vmul.f32 %v1677_v24, %v1669_v29 }
 0x1ae   : > { %v1690_v33 = vmul.f32 %v1681_v27, %v1670_v31 }
 0x1af   : > { %v1692_v35 = vsel %vm217_vm1, %v1689_v32, 0.0 }
 0x1b0   : > { %v1693_v36 = vsel %vm217_vm1, %v1690_v33, 0.0 }
 0x1b1   : > { %v1694_v37 = vadd.f32 %v1693_v36, %v1692_v35 }
 0x1b3   : > { %v1697_v39 = vadd.f32 %v1696_v38, %v1694_v37 }
 0x1b5   : > { %1698 = vadd.xlane.f32.xlu1 %v1697_v39 }
 0x242   : > { %v1699_v40 = vpop.xlane.xlu1 %1698 }
 0x243   : > { %v1701_v41 = vmul.f32 0.00390625, %v1699_v40 }
 0x245   : > { %v1702_v42 = vsub.f32 %v1669_v29, %v1701_v41  ;;  %v1703_v43 = vsub.f32 %v1670_v31, %v1701_v41  ;;  %v1704_v44 = vsub.f32 %v1671_v25, %v1701_v41 }
 0x247   : > { %v1705_v45 = vmul.f32 %v1702_v42, %v1677_v24  ;;  %v1706_v46 = vmul.f32 %v1703_v43, %v1681_v27  ;;  %v1707_v47 = vmul.f32 %v1704_v44, %v1685_v28 }
 0x249   : > { %v1708_v48 = vmul.f32 %v1705_v45, %v1705_v45  ;;  %v1709_v49 = vmul.f32 %v1706_v46, %v1706_v46  ;;  %v1710_v50 = vmul.f32 %v1707_v47, %v1707_v47 }
 0x24b   : > { %v1711_v51 = vsel %vm217_vm1, %v1708_v48, 0.0  ;;  %v1712_v52 = vsel %vm217_vm1, %v1709_v49, 0.0  ;;  %v1714_v54 = vsel %vm1695_vm11, %v1710_v50, 0.0 }
 0x24c   : > { %v1713_v53 = vadd.f32 %v1712_v52, %v1711_v51 }
 0x24e   : > { %v1715_v55 = vadd.f32 %v1714_v54, %v1713_v53 }
 0x250   : > { %1716 = vadd.xlane.f32.xlu0 %v1715_v55 }
 0x2dd   : > { %v1717_v56 = vpop.xlane.xlu0 %1716 }
 0x2de   : > { %v1718_v57 = vmul.f32 0.00390625, %v1717_v56 }
 0x2e0   : > { %v1719_v58 = vadd.f32 1e-05, %v1718_v57 }
 0x2e2   : > { %2002 = vrsqrt.f32 %v1719_v58 }
 0x2ec   : > { %v2003_v59 = vpop.eup %2002 }
 0x2ed   : > { %v1721_v60 = vmul.f32 %v2003_v59, %v1702_v42  ;;  %v1722_v61 = vmul.f32 %v2003_v59, %v1703_v43  ;;  %v1723_v62 = vmul.f32 %v2003_v59, %v1704_v44 }
 0x2ef   : > { %v1724_v63 = vmax.f32 %v1721_v60, 0.0  ;;  %v1725_v1 = vmax.f32 %v1722_v61, 0.0  ;;  %v1726_v2 = vmax.f32 %v1723_v62, 0.0 }
 0x2f1   : > { %v1729_v3 = vcombine.low %v1724_v63, %v1725_v1  ;;  %1732 = vst.msk [vmem:[%s190_s5 + $0x8] sm:$0xf] %vm1695_vm11, %v1726_v2 }
 0x2f3   : > { %1731 = vst [vmem:[%s190_s5] sm:$0xff] %v1729_v3 }
 0x2f4   : > { %2017 = shalt.err (!%p2014_p3)
}
 0x2f5   : > { %s2018_s14 = scalar_lea.hbm %s2294_s9, 192  ;;  %s2022_s23 = scalar_lea.hbm %s2340_s4, 384 }
 0x2f6   : > { %p2019_p4 = scmp.ne.s32.totalorder %s2294_s9, %s2018_s14  ;;  %p2023_p9 = scmp.lt.u32.totalorder %s2294_s9, %s2340_s4 }
 0x2f7   : > { %p2024_p10 = scmp.lt.u32.totalorder %s2022_s23, %s2018_s14  ;;  %p2026_p12 = scmp.lt.u32.totalorder %s2018_s14, %s2294_s9 }
 0x2f8   : > { %p2020_p7 = pnand %p2019_p4, %p2143_p5 }
 0x2f9   : > { %p2025_p11 = por %p2024_p10, %p2023_p9 }
 0x2fa   : > { %p2021_p8 = pneg %p2020_p7 }
 0x2fb   : > { %p2027_p13 = por %p2026_p12, %p2025_p11 }
 0x2fd   : > { %p2028_p0 = pnand %p2027_p13, %p2021_p8 }
 0x2ff   : > { %2031 = shalt.err (!%p2028_p0)
}
 0x300   : > { %1950 = dma.vmem_to_hbm [thread:$0]  (%p2143_p5), %s2296_s6, 192, %s2294_s9, %s1734_s19  }
 0x301 PF: > { %p1956_p1 = scmp.ge.s32.totalorder %s2066_s18, 2  ;;  %s1760_s29 = sand.u32 1, %s2054_s15  }
 0x302   : > { %s1761_s30 = scalar_lea.sflag [#allocation3], %s1760_s29 }
 0x303   : > { %p1953_p2 = pnand %p1956_p1, %p2147_p6 }
 0x305   : > { %2049 = dma.done.wait (!%p1953_p2), %s1761_s30, 192  }
 0x306   : > { %2051 = vsyncadd (!%p1953_p2), %s1761_s30, 4294967104  ;;  %p14_p3 = scmp.ge.s32.totalorder %s2130_s21, 4   ;;  %s2343_s15 = smov %s2058_s16 }
 0x307   : > { %s2344_s16 = smov %s2062_s17  ;;  %s2345_s17 = smov %s2141_s24 }
 0x308   : > { %s2346_s18 = smov %s2130_s21  ;;  %16 = sbr.rel (!%p14_p3) target bundleno = 3 (0x3), region = 79 }
 0x30f   :  { %1766 = vsyncpa [#allocation3], 1 }
 0x310   :  { %1768 = vsyncpa [#allocation3 + $0x1], 1 }

</bundles_post_ra>
